<compile_context>
chip_gen: v7x
topology: tpu7x:2x2x1
jax: 0.10.0
libtpu: 0.0.40
codegen_flags: <defaults>
</compile_context>

<pallas_src>
import functools

import jax
import jax.numpy as jnp
from jax import lax
from jax.experimental import pallas as pl
from jax.experimental.pallas import tpu as pltpu


def _siglip_attn_kernel(x_ref, w_ref, b_ref, *out_refs,
                        heads_per_block, head_dim, mxu_dtype, has_wts):
    # x_ref:       (1, S, D)
    # w_ref:       (1, D, 3*hpb*hd)   columns = [Q heads | K heads | V heads]
    # b_ref:       (1, 1, 3*hpb*hd)   (f32)
    # out_refs[0]: (1, S, hpb*hd)     slab of the (B, S, D) output
    # out_refs[1]: (1, hpb, S, S)     attention weights (only if has_wts)
    out_ref = out_refs[0]
    wts_ref = out_refs[1] if has_wts else None

    hpb, hd = heads_per_block, head_dim
    HD = hpb * hd

    # Single fused QKV projection (MXU N = 3*hpb*hd); bf16 inputs, f32 acc.
    # Query weights/bias are pre-scaled by head_dim**-0.5 in the wrapper.
    x = x_ref[0].astype(mxu_dtype)                                   # (S, D)
    qkv = jnp.dot(x, w_ref[0], preferred_element_type=jnp.float32) + b_ref[0]
    q_all = qkv[:, 0 * HD:1 * HD]                                    # (S, HD) f32
    k_all = qkv[:, 1 * HD:2 * HD]
    v_all = qkv[:, 2 * HD:3 * HD]

    # TODO(synk): for configs forced into very large head groups (e.g.
    # head_dim=72 -> hpb=num_heads) and/or long sequences on v7x (64 MiB VMEM),
    # switch this static unroll to a bounded lax.fori_loop over heads and add
    # a flash-style query-tile grid axis.
    for h in range(hpb):                       # static unroll, small hpb
        q = q_all[:, h * hd:(h + 1) * hd].astype(mxu_dtype)          # (S, hd)
        k = k_all[:, h * hd:(h + 1) * hd].astype(mxu_dtype)
        v = v_all[:, h * hd:(h + 1) * hd].astype(mxu_dtype)

        # q @ k^T without materializing a transpose of k; f32 accumulation.
        scores = lax.dot_general(q, k, (((1,), (1,)), ((), ())),
                                 preferred_element_type=jnp.float32)  # (S, S)

        # softmax statistics in float32 (attention dropout p = 0.0 -> identity)
        m = jnp.max(scores, axis=-1, keepdims=True)
        p = jnp.exp(scores - m)
        l = jnp.sum(p, axis=-1, keepdims=True)
        inv_l = pl.reciprocal(l)                                      # exact, (S, 1)

        if wts_ref is not None:
            w = p * inv_l                                             # (S, S)
            wts_ref[0, h] = w.astype(wts_ref.dtype)
            o = jnp.dot(w.astype(mxu_dtype), v,
                        preferred_element_type=jnp.float32)           # (S, hd)
        else:
            # Deferred normalization: scale the (S, hd) result, not (S, S).
            o = jnp.dot(p.astype(mxu_dtype), v,
                        preferred_element_type=jnp.float32)
            o = o * inv_l

        # Direct static column store into the (1, S, HD) output block.
        out_ref[0, :, h * hd:(h + 1) * hd] = o.astype(out_ref.dtype)


def _pick_heads_per_block(num_heads, head_dim, target_lanes=256):
    """Smallest head group whose fused width is 128-lane aligned and reaches
    target_lanes (256 feeds the 2x256^2 MXU on v6e/v7x); falls back to all
    heads (block width == hidden size, always legal)."""
    legal = [h for h in range(1, num_heads + 1)
             if num_heads % h == 0 and (h * head_dim) % 128 == 0]
    if not legal:
        return num_heads
    for h in legal:
        if h * head_dim >= target_lanes:
            return h
    return legal[-1]


def _chip_vmem_bytes():
    try:
        return int(pltpu.get_tpu_info().vmem_capacity_bytes)
    except Exception:
        return 64 * 2 ** 20        # conservative (v7x per-TC VMEM)


def siglip_attention(hidden_states, params, num_heads, *,
                     heads_per_block=None, return_attn_weights=False,
                     mxu_dtype=jnp.bfloat16):
    """Pallas implementation of SiglipAttention.forward.

    Returns (attn_outputs (B, S, D), attn_weights (B, H, S, S) or None).
    """
    B, S, D = hidden_states.shape
    hd = D // num_heads
    scale = hd ** -0.5
    dtype = hidden_states.dtype

    hpb = heads_per_block or _pick_heads_per_block(num_heads, hd)
    assert num_heads % hpb == 0
    HD = hpb * hd
    nb = num_heads // hpb

    # --- wrapper-side weight prep (one-time transform, outside the kernel) ---
    # torch nn.Linear computes x @ W.T + b with W of shape (D_out, D_in).
    # Fold the softmax scale into the query projection and fuse Q|K|V of each
    # head block into a single (D, 3*hpb*hd) slab, pre-cast to the MXU dtype.
    def blockify_w(w, s=1.0):       # (D, D) -> (nb, D, hpb*hd)
        return (w.T * s).reshape(D, nb, HD).transpose(1, 0, 2)

    def blockify_b(b, s=1.0):       # (D,)   -> (nb, 1, hpb*hd)
        return (b * s).reshape(nb, 1, HD)

    w_fused = jnp.concatenate(
        [blockify_w(params["wq"], scale),
         blockify_w(params["wk"]),
         blockify_w(params["wv"])], axis=-1).astype(mxu_dtype)   # (nb, D, 3*HD)
    b_fused = jnp.concatenate(
        [blockify_b(params["bq"], scale),
         blockify_b(params["bk"]),
         blockify_b(params["bv"])], axis=-1).astype(jnp.float32)  # (nb, 1, 3*HD)

    out_shapes = [jax.ShapeDtypeStruct((B, S, D), dtype)]
    out_specs = [pl.BlockSpec((1, S, HD), lambda h, b: (b, 0, h))]
    if return_attn_weights:
        out_shapes.append(jax.ShapeDtypeStruct((B, num_heads, S, S), dtype))
        out_specs.append(pl.BlockSpec((1, hpb, S, S), lambda h, b: (b, h, 0, 0)))

    x_item = jnp.dtype(dtype).itemsize
    w_item = jnp.dtype(mxu_dtype).itemsize

    # Cost estimate (weights now streamed once thanks to grid=(nb, B)).
    flops = 2 * B * S * D * 3 * D + 4 * B * num_heads * S * S * hd
    bytes_accessed = (
        B * nb * S * D * x_item            # activations (re-read per head block)
        + D * 3 * D * w_item + 3 * D * 4   # fused weights (once) + bias
        + B * S * D * x_item               # attention output
        + (B * num_heads * S * S * x_item if return_attn_weights else 0))
    cost = pl.CostEstimate(flops=int(flops),
                           transcendentals=int(B * num_heads * S * S),
                           bytes_accessed=int(bytes_accessed))

    # Per-step VMEM: double-buffered DMA blocks + f32 compute intermediates
    # (qkv slab, scores/exp, per-head outputs), clamped to the chip's VMEM.
    dma_bytes = (S * D * x_item + D * 3 * HD * w_item + 3 * HD * 4
                 + S * HD * x_item
                 + (hpb * S * S * x_item if return_attn_weights else 0))
    interm_bytes = 4 * (S * 3 * HD + 6 * S * S + 2 * S * HD)
    need = 2 * dma_bytes + interm_bytes
    cap = max(_chip_vmem_bytes() - 16 * 2 ** 20, 16 * 2 ** 20)
    vmem_limit = int(min(max(int(1.5 * need), 32 * 2 ** 20), cap))

    kernel = functools.partial(_siglip_attn_kernel,
                               heads_per_block=hpb, head_dim=hd,
                               mxu_dtype=mxu_dtype,
                               has_wts=return_attn_weights)

    outs = pl.pallas_call(
        kernel,
        out_shape=tuple(out_shapes),
        grid_spec=pltpu.PrefetchScalarGridSpec(
            num_scalar_prefetch=0,
            # Head-block axis outermost, batch innermost: the weight block
            # index is constant across the inner axis, so the QKV weight slab
            # stays resident in VMEM instead of being re-streamed per batch.
            grid=(nb, B),
            in_specs=[
                pl.BlockSpec((1, S, D), lambda h, b: (b, 0, 0)),        # x
                pl.BlockSpec((1, D, 3 * HD), lambda h, b: (h, 0, 0)),   # fused W
                pl.BlockSpec((1, 1, 3 * HD), lambda h, b: (h, 0, 0)),   # fused b
            ],
            out_specs=tuple(out_specs),
        ),
        compiler_params=pltpu.CompilerParams(
            dimension_semantics=("parallel", "parallel"),
            vmem_limit_bytes=vmem_limit),
        cost_estimate=cost,
    )(hidden_states, w_fused, b_fused)

    if return_attn_weights:
        return outs[0], outs[1]
    return outs[0], None


def siglip_attention_reference(hidden_states, params, num_heads):
    """Pure-JAX reference mirroring the PyTorch forward exactly."""
    B, S, D = hidden_states.shape
    hd = D // num_heads
    scale = hd ** -0.5

    def linear(x, w, b):              # torch nn.Linear: x @ W.T + b
        return x @ w.T + b

    q = linear(hidden_states, params["wq"], params["bq"])
    k = linear(hidden_states, params["wk"], params["bk"])
    v = linear(hidden_states, params["wv"], params["bv"])

    def split(t):
        return jnp.transpose(t.reshape(B, S, num_heads, hd), (0, 2, 1, 3))

    q, k, v = split(q), split(k), split(v)
    aw = jnp.einsum("bhqd,bhkd->bhqk", q, k) * scale
    aw = jax.nn.softmax(aw.astype(jnp.float32), axis=-1).astype(q.dtype)
    out = jnp.einsum("bhqk,bhkd->bhqd", aw, v)
    out = jnp.transpose(out, (0, 2, 1, 3)).reshape(B, S, D)
    return out, aw


if __name__ == "__main__":
    def make_params(hidden, key):
        kq, kk, kv, kbq, kbk, kbv = jax.random.split(key, 6)
        return {
            "wq": jax.random.normal(kq, (hidden, hidden), jnp.float32) * 0.02,
            "wk": jax.random.normal(kk, (hidden, hidden), jnp.float32) * 0.02,
            "wv": jax.random.normal(kv, (hidden, hidden), jnp.float32) * 0.02,
            "bq": jax.random.normal(kbq, (hidden,), jnp.float32) * 0.02,
            "bk": jax.random.normal(kbk, (hidden,), jnp.float32) * 0.02,
            "bv": jax.random.normal(kbv, (hidden,), jnp.float32) * 0.02,
        }

    def run_case(batch, seq, hidden, num_heads, key, *,
                 mxu_dtype, tol, with_weights):
        kx, kp = jax.random.split(key)
        x = jax.random.normal(kx, (batch, seq, hidden), jnp.float32)
        params = make_params(hidden, kp)

        out, w = siglip_attention(x, params, num_heads,
                                  return_attn_weights=with_weights,
                                  mxu_dtype=mxu_dtype)
        jax.block_until_ready(out if w is None else (out, w))

        ref_out, ref_w = siglip_attention_reference(x, params, num_heads)
        assert out.shape == (batch, seq, hidden)
        assert jnp.allclose(out, ref_out, atol=tol, rtol=tol), "output mismatch"
        if with_weights:
            assert w.shape == (batch, num_heads, seq, seq)
            assert jnp.allclose(w, ref_w, atol=tol, rtol=tol), "weights mismatch"
        else:
            assert w is None

    key = jax.random.PRNGKey(0)
    k1, k2, k3, k4 = jax.random.split(key, 4)

    # Exact-f32 MXU path, with attention weights (tight tolerance).
    run_case(batch=2, seq=8, hidden=32, num_heads=4, key=k1,
             mxu_dtype=jnp.float32, tol=2e-5, with_weights=True)
    # Exact-f32 MXU path, output only (exercises deferred normalization).
    run_case(batch=2, seq=8, hidden=32, num_heads=4, key=k2,
             mxu_dtype=jnp.float32, tol=2e-5, with_weights=False)
    # Default bf16 MXU path, head_dim=64 -> fused 256-lane head block.
    run_case(batch=1, seq=16, hidden=256, num_heads=4, key=k3,
             mxu_dtype=jnp.bfloat16, tol=5e-2, with_weights=False)
    # bf16 MXU path with attention weights materialized.
    run_case(batch=1, seq=16, hidden=256, num_heads=4, key=k4,
             mxu_dtype=jnp.bfloat16, tol=5e-2, with_weights=True)

    print("KERNEL_OK")
</pallas_src>

<mosaic_0001>
module attributes {stable_mosaic.version = 11 : i64} {
  func.func @_siglip_attn_kernel(%arg0: i32, %arg1: i32, %arg2: memref<1x8x32xf32, #tpu.memory_space<vmem>>, %arg3: memref<1x32x96xf32, #tpu.memory_space<vmem>>, %arg4: memref<1x1x96xf32, #tpu.memory_space<vmem>>, %arg5: memref<1x8x32xf32, #tpu.memory_space<vmem>>, %arg6: memref<1x4x8x8xf32, #tpu.memory_space<vmem>>) attributes {dimension_semantics = [#tpu.dimension_semantics<parallel>, #tpu.dimension_semantics<parallel>], iteration_bounds = array<i64: 1, 2>, scalar_prefetch = 0 : i64, scratch_operands = 0 : i64, tpu.core_type = #tpu.core_type<tc>, window_params = [{transform_indices = @transform_0, window_bounds = array<i64: 1, 8, 32>}, {transform_indices = @transform_1, window_bounds = array<i64: 1, 32, 96>}, {transform_indices = @transform_2, window_bounds = array<i64: 1, 1, 96>}, {transform_indices = @transform_3, window_bounds = array<i64: 1, 8, 32>}, {transform_indices = @transform_4, window_bounds = array<i64: 1, 4, 8, 8>}]} {
    %c0 = arith.constant 0 : index
    %c0_0 = arith.constant 0 : index
    %c0_1 = arith.constant 0 : index
    %0 = vector.load %arg2[%c0, %c0_0, %c0_1] : memref<1x8x32xf32, #tpu.memory_space<vmem>>, vector<1x8x32xf32>
    %1 = vector.shape_cast %0 : vector<1x8x32xf32> to vector<8x32xf32>
    %c0_2 = arith.constant 0 : index
    %c0_3 = arith.constant 0 : index
    %c0_4 = arith.constant 0 : index
    %2 = vector.load %arg3[%c0_2, %c0_3, %c0_4] : memref<1x32x96xf32, #tpu.memory_space<vmem>>, vector<1x32x96xf32>
    %3 = vector.shape_cast %2 : vector<1x32x96xf32> to vector<32x96xf32>
    %cst = arith.constant dense<0.000000e+00> : vector<8x96xf32>
    %4 = tpu.matmul %1, %3, %cst {dimension_numbers = #tpu.dot_dimension_numbers<[1], [0], [0], [1], [0, 0, 1, 1], [], []>} : vector<8x32xf32>, vector<32x96xf32>, vector<8x96xf32> -> vector<8x96xf32>
    %c0_5 = arith.constant 0 : index
    %c0_6 = arith.constant 0 : index
    %c0_7 = arith.constant 0 : index
    %5 = vector.load %arg4[%c0_5, %c0_6, %c0_7] : memref<1x1x96xf32, #tpu.memory_space<vmem>>, vector<1x1x96xf32>
    %6 = vector.shape_cast %5 : vector<1x1x96xf32> to vector<1x96xf32>
    %7 = vector.broadcast %6 : vector<1x96xf32> to vector<8x96xf32>
    %8 = arith.addf %4, %7 : vector<8x96xf32>
    %9 = vector.extract_strided_slice %8 {offsets = [0, 0], sizes = [8, 32], strides = [1, 1]} : vector<8x96xf32> to vector<8x32xf32>
    %10 = vector.extract_strided_slice %8 {offsets = [0, 32], sizes = [8, 32], strides = [1, 1]} : vector<8x96xf32> to vector<8x32xf32>
    %11 = vector.extract_strided_slice %8 {offsets = [0, 64], sizes = [8, 32], strides = [1, 1]} : vector<8x96xf32> to vector<8x32xf32>
    %12 = vector.extract_strided_slice %9 {offsets = [0, 0], sizes = [8, 8], strides = [1, 1]} : vector<8x32xf32> to vector<8x8xf32>
    %13 = vector.extract_strided_slice %10 {offsets = [0, 0], sizes = [8, 8], strides = [1, 1]} : vector<8x32xf32> to vector<8x8xf32>
    %14 = vector.extract_strided_slice %11 {offsets = [0, 0], sizes = [8, 8], strides = [1, 1]} : vector<8x32xf32> to vector<8x8xf32>
    %cst_8 = arith.constant dense<0.000000e+00> : vector<8x8xf32>
    %15 = tpu.matmul %12, %13, %cst_8 {dimension_numbers = #tpu.dot_dimension_numbers<[1], [1], [0], [0], [0, 0, 1, 0], [], []>} : vector<8x8xf32>, vector<8x8xf32>, vector<8x8xf32> -> vector<8x8xf32>
    %cst_9 = arith.constant dense<0xFF800000> : vector<8xf32>
    %16 = vector.multi_reduction <maximumf>, %15, %cst_9 [1] : vector<8x8xf32> to vector<8xf32>
    %17 = vector.shape_cast %16 : vector<8xf32> to vector<8x1xf32>
    %18 = vector.broadcast %17 : vector<8x1xf32> to vector<8x8xf32>
    %19 = arith.subf %15, %18 : vector<8x8xf32>
    %20 = math.exp %19 : vector<8x8xf32>
    %cst_10 = arith.constant dense<0.000000e+00> : vector<8xf32>
    %21 = vector.multi_reduction <add>, %20, %cst_10 [1] : vector<8x8xf32> to vector<8xf32>
    %22 = vector.shape_cast %21 : vector<8xf32> to vector<8x1xf32>
    %23 = tpu.reciprocal %22 : vector<8x1xf32> -> vector<8x1xf32>
    %24 = vector.broadcast %23 : vector<8x1xf32> to vector<8x8xf32>
    %25 = arith.mulf %20, %24 : vector<8x8xf32>
    %c0_11 = arith.constant 0 : index
    %c0_12 = arith.constant 0 : index
    %c0_13 = arith.constant 0 : index
    %c0_14 = arith.constant 0 : index
    %26 = vector.load %arg6[%c0_11, %c0_12, %c0_13, %c0_14] : memref<1x4x8x8xf32, #tpu.memory_space<vmem>>, vector<1x1x8x8xf32>
    %27 = vector.shape_cast %26 : vector<1x1x8x8xf32> to vector<8x8xf32>
    %28 = vector.shape_cast %25 : vector<8x8xf32> to vector<1x1x8x8xf32>
    tpu.vector_store %arg6[%c0_11, %c0_12, %c0_13, %c0_14], %28 {strides = array<i32>} : memref<1x4x8x8xf32, #tpu.memory_space<vmem>>, vector<1x1x8x8xf32>,
    %cst_15 = arith.constant dense<0.000000e+00> : vector<8x8xf32>
    %29 = tpu.matmul %25, %14, %cst_15 {dimension_numbers = #tpu.dot_dimension_numbers<[1], [0], [0], [1], [0, 0, 1, 1], [], []>} : vector<8x8xf32>, vector<8x8xf32>, vector<8x8xf32> -> vector<8x8xf32>
    %c0_16 = arith.constant 0 : index
    %c0_17 = arith.constant 0 : index
    %c0_18 = arith.constant 0 : index
    %30 = vector.load %arg5[%c0_16, %c0_17, %c0_18] : memref<1x8x32xf32, #tpu.memory_space<vmem>>, vector<1x8x8xf32>
    %31 = vector.shape_cast %30 : vector<1x8x8xf32> to vector<8x8xf32>
    %32 = vector.shape_cast %29 : vector<8x8xf32> to vector<1x8x8xf32>
    tpu.vector_store %arg5[%c0_16, %c0_17, %c0_18], %32 {strides = array<i32>} : memref<1x8x32xf32, #tpu.memory_space<vmem>>, vector<1x8x8xf32>,
    %33 = vector.extract_strided_slice %9 {offsets = [0, 8], sizes = [8, 8], strides = [1, 1]} : vector<8x32xf32> to vector<8x8xf32>
    %34 = vector.extract_strided_slice %10 {offsets = [0, 8], sizes = [8, 8], strides = [1, 1]} : vector<8x32xf32> to vector<8x8xf32>
    %35 = vector.extract_strided_slice %11 {offsets = [0, 8], sizes = [8, 8], strides = [1, 1]} : vector<8x32xf32> to vector<8x8xf32>
    %cst_19 = arith.constant dense<0.000000e+00> : vector<8x8xf32>
    %36 = tpu.matmul %33, %34, %cst_19 {dimension_numbers = #tpu.dot_dimension_numbers<[1], [1], [0], [0], [0, 0, 1, 0], [], []>} : vector<8x8xf32>, vector<8x8xf32>, vector<8x8xf32> -> vector<8x8xf32>
    %cst_20 = arith.constant dense<0xFF800000> : vector<8xf32>
    %37 = vector.multi_reduction <maximumf>, %36, %cst_20 [1] : vector<8x8xf32> to vector<8xf32>
    %38 = vector.shape_cast %37 : vector<8xf32> to vector<8x1xf32>
    %39 = vector.broadcast %38 : vector<8x1xf32> to vector<8x8xf32>
    %40 = arith.subf %36, %39 : vector<8x8xf32>
    %41 = math.exp %40 : vector<8x8xf32>
    %cst_21 = arith.constant dense<0.000000e+00> : vector<8xf32>
    %42 = vector.multi_reduction <add>, %41, %cst_21 [1] : vector<8x8xf32> to vector<8xf32>
    %43 = vector.shape_cast %42 : vector<8xf32> to vector<8x1xf32>
    %44 = tpu.reciprocal %43 : vector<8x1xf32> -> vector<8x1xf32>
    %45 = vector.broadcast %44 : vector<8x1xf32> to vector<8x8xf32>
    %46 = arith.mulf %41, %45 : vector<8x8xf32>
    %c0_22 = arith.constant 0 : index
    %c1 = arith.constant 1 : index
    %c0_23 = arith.constant 0 : index
    %c0_24 = arith.constant 0 : index
    %47 = vector.load %arg6[%c0_22, %c1, %c0_23, %c0_24] : memref<1x4x8x8xf32, #tpu.memory_space<vmem>>, vector<1x1x8x8xf32>
    %48 = vector.shape_cast %47 : vector<1x1x8x8xf32> to vector<8x8xf32>
    %49 = vector.shape_cast %46 : vector<8x8xf32> to vector<1x1x8x8xf32>
    tpu.vector_store %arg6[%c0_22, %c1, %c0_23, %c0_24], %49 {strides = array<i32>} : memref<1x4x8x8xf32, #tpu.memory_space<vmem>>, vector<1x1x8x8xf32>,
    %cst_25 = arith.constant dense<0.000000e+00> : vector<8x8xf32>
    %50 = tpu.matmul %46, %35, %cst_25 {dimension_numbers = #tpu.dot_dimension_numbers<[1], [0], [0], [1], [0, 0, 1, 1], [], []>} : vector<8x8xf32>, vector<8x8xf32>, vector<8x8xf32> -> vector<8x8xf32>
    %c0_26 = arith.constant 0 : index
    %c0_27 = arith.constant 0 : index
    %c8 = arith.constant 8 : index
    %51 = vector.load %arg5[%c0_26, %c0_27, %c8] : memref<1x8x32xf32, #tpu.memory_space<vmem>>, vector<1x8x8xf32>
    %52 = vector.shape_cast %51 : vector<1x8x8xf32> to vector<8x8xf32>
    %53 = vector.shape_cast %50 : vector<8x8xf32> to vector<1x8x8xf32>
    tpu.vector_store %arg5[%c0_26, %c0_27, %c8], %53 {strides = array<i32>} : memref<1x8x32xf32, #tpu.memory_space<vmem>>, vector<1x8x8xf32>,
    %54 = vector.extract_strided_slice %9 {offsets = [0, 16], sizes = [8, 8], strides = [1, 1]} : vector<8x32xf32> to vector<8x8xf32>
    %55 = vector.extract_strided_slice %10 {offsets = [0, 16], sizes = [8, 8], strides = [1, 1]} : vector<8x32xf32> to vector<8x8xf32>
    %56 = vector.extract_strided_slice %11 {offsets = [0, 16], sizes = [8, 8], strides = [1, 1]} : vector<8x32xf32> to vector<8x8xf32>
    %cst_28 = arith.constant dense<0.000000e+00> : vector<8x8xf32>
    %57 = tpu.matmul %54, %55, %cst_28 {dimension_numbers = #tpu.dot_dimension_numbers<[1], [1], [0], [0], [0, 0, 1, 0], [], []>} : vector<8x8xf32>, vector<8x8xf32>, vector<8x8xf32> -> vector<8x8xf32>
    %cst_29 = arith.constant dense<0xFF800000> : vector<8xf32>
    %58 = vector.multi_reduction <maximumf>, %57, %cst_29 [1] : vector<8x8xf32> to vector<8xf32>
    %59 = vector.shape_cast %58 : vector<8xf32> to vector<8x1xf32>
    %60 = vector.broadcast %59 : vector<8x1xf32> to vector<8x8xf32>
    %61 = arith.subf %57, %60 : vector<8x8xf32>
    %62 = math.exp %61 : vector<8x8xf32>
    %cst_30 = arith.constant dense<0.000000e+00> : vector<8xf32>
    %63 = vector.multi_reduction <add>, %62, %cst_30 [1] : vector<8x8xf32> to vector<8xf32>
    %64 = vector.shape_cast %63 : vector<8xf32> to vector<8x1xf32>
    %65 = tpu.reciprocal %64 : vector<8x1xf32> -> vector<8x1xf32>
    %66 = vector.broadcast %65 : vector<8x1xf32> to vector<8x8xf32>
    %67 = arith.mulf %62, %66 : vector<8x8xf32>
    %c0_31 = arith.constant 0 : index
    %c2 = arith.constant 2 : index
    %c0_32 = arith.constant 0 : index
    %c0_33 = arith.constant 0 : index
    %68 = vector.load %arg6[%c0_31, %c2, %c0_32, %c0_33] : memref<1x4x8x8xf32, #tpu.memory_space<vmem>>, vector<1x1x8x8xf32>
    %69 = vector.shape_cast %68 : vector<1x1x8x8xf32> to vector<8x8xf32>
    %70 = vector.shape_cast %67 : vector<8x8xf32> to vector<1x1x8x8xf32>
    tpu.vector_store %arg6[%c0_31, %c2, %c0_32, %c0_33], %70 {strides = array<i32>} : memref<1x4x8x8xf32, #tpu.memory_space<vmem>>, vector<1x1x8x8xf32>,
    %cst_34 = arith.constant dense<0.000000e+00> : vector<8x8xf32>
    %71 = tpu.matmul %67, %56, %cst_34 {dimension_numbers = #tpu.dot_dimension_numbers<[1], [0], [0], [1], [0, 0, 1, 1], [], []>} : vector<8x8xf32>, vector<8x8xf32>, vector<8x8xf32> -> vector<8x8xf32>
    %c0_35 = arith.constant 0 : index
    %c0_36 = arith.constant 0 : index
    %c16 = arith.constant 16 : index
    %72 = vector.load %arg5[%c0_35, %c0_36, %c16] : memref<1x8x32xf32, #tpu.memory_space<vmem>>, vector<1x8x8xf32>
    %73 = vector.shape_cast %72 : vector<1x8x8xf32> to vector<8x8xf32>
    %74 = vector.shape_cast %71 : vector<8x8xf32> to vector<1x8x8xf32>
    tpu.vector_store %arg5[%c0_35, %c0_36, %c16], %74 {strides = array<i32>} : memref<1x8x32xf32, #tpu.memory_space<vmem>>, vector<1x8x8xf32>,
    %75 = vector.extract_strided_slice %9 {offsets = [0, 24], sizes = [8, 8], strides = [1, 1]} : vector<8x32xf32> to vector<8x8xf32>
    %76 = vector.extract_strided_slice %10 {offsets = [0, 24], sizes = [8, 8], strides = [1, 1]} : vector<8x32xf32> to vector<8x8xf32>
    %77 = vector.extract_strided_slice %11 {offsets = [0, 24], sizes = [8, 8], strides = [1, 1]} : vector<8x32xf32> to vector<8x8xf32>
    %cst_37 = arith.constant dense<0.000000e+00> : vector<8x8xf32>
    %78 = tpu.matmul %75, %76, %cst_37 {dimension_numbers = #tpu.dot_dimension_numbers<[1], [1], [0], [0], [0, 0, 1, 0], [], []>} : vector<8x8xf32>, vector<8x8xf32>, vector<8x8xf32> -> vector<8x8xf32>
    %cst_38 = arith.constant dense<0xFF800000> : vector<8xf32>
    %79 = vector.multi_reduction <maximumf>, %78, %cst_38 [1] : vector<8x8xf32> to vector<8xf32>
    %80 = vector.shape_cast %79 : vector<8xf32> to vector<8x1xf32>
    %81 = vector.broadcast %80 : vector<8x1xf32> to vector<8x8xf32>
    %82 = arith.subf %78, %81 : vector<8x8xf32>
    %83 = math.exp %82 : vector<8x8xf32>
    %cst_39 = arith.constant dense<0.000000e+00> : vector<8xf32>
    %84 = vector.multi_reduction <add>, %83, %cst_39 [1] : vector<8x8xf32> to vector<8xf32>
    %85 = vector.shape_cast %84 : vector<8xf32> to vector<8x1xf32>
    %86 = tpu.reciprocal %85 : vector<8x1xf32> -> vector<8x1xf32>
    %87 = vector.broadcast %86 : vector<8x1xf32> to vector<8x8xf32>
    %88 = arith.mulf %83, %87 : vector<8x8xf32>
    %c0_40 = arith.constant 0 : index
    %c3 = arith.constant 3 : index
    %c0_41 = arith.constant 0 : index
    %c0_42 = arith.constant 0 : index
    %89 = vector.load %arg6[%c0_40, %c3, %c0_41, %c0_42] : memref<1x4x8x8xf32, #tpu.memory_space<vmem>>, vector<1x1x8x8xf32>
    %90 = vector.shape_cast %89 : vector<1x1x8x8xf32> to vector<8x8xf32>
    %91 = vector.shape_cast %88 : vector<8x8xf32> to vector<1x1x8x8xf32>
    tpu.vector_store %arg6[%c0_40, %c3, %c0_41, %c0_42], %91 {strides = array<i32>} : memref<1x4x8x8xf32, #tpu.memory_space<vmem>>, vector<1x1x8x8xf32>,
    %cst_43 = arith.constant dense<0.000000e+00> : vector<8x8xf32>
    %92 = tpu.matmul %88, %77, %cst_43 {dimension_numbers = #tpu.dot_dimension_numbers<[1], [0], [0], [1], [0, 0, 1, 1], [], []>} : vector<8x8xf32>, vector<8x8xf32>, vector<8x8xf32> -> vector<8x8xf32>
    %c0_44 = arith.constant 0 : index
    %c0_45 = arith.constant 0 : index
    %c24 = arith.constant 24 : index
    %93 = vector.load %arg5[%c0_44, %c0_45, %c24] : memref<1x8x32xf32, #tpu.memory_space<vmem>>, vector<1x8x8xf32>
    %94 = vector.shape_cast %93 : vector<1x8x8xf32> to vector<8x8xf32>
    %95 = vector.shape_cast %92 : vector<8x8xf32> to vector<1x8x8xf32>
    tpu.vector_store %arg5[%c0_44, %c0_45, %c24], %95 {strides = array<i32>} : memref<1x8x32xf32, #tpu.memory_space<vmem>>, vector<1x8x8xf32>,
    return
  }
  func.func @transform_0(%arg0: i32, %arg1: i32) -> (i32, i32, i32) {
    %c0_i32 = arith.constant 0 : i32
    %c0_i32_0 = arith.constant 0 : i32
    %c0_i32_1 = arith.constant 0 : i32
    return %arg1, %c0_i32, %c0_i32_0 : i32, i32, i32
  }
  func.func @transform_1(%arg0: i32, %arg1: i32) -> (i32, i32, i32) {
    %c0_i32 = arith.constant 0 : i32
    %c0_i32_0 = arith.constant 0 : i32
    %c0_i32_1 = arith.constant 0 : i32
    return %arg0, %c0_i32, %c0_i32_0 : i32, i32, i32
  }
  func.func @transform_2(%arg0: i32, %arg1: i32) -> (i32, i32, i32) {
    %c0_i32 = arith.constant 0 : i32
    %c0_i32_0 = arith.constant 0 : i32
    %c0_i32_1 = arith.constant 0 : i32
    return %arg0, %c0_i32, %c0_i32_0 : i32, i32, i32
  }
  func.func @transform_3(%arg0: i32, %arg1: i32) -> (i32, i32, i32) {
    %c0_i32 = arith.constant 0 : i32
    %c0_i32_0 = arith.constant 0 : i32
    return %arg1, %c0_i32, %arg0 : i32, i32, i32
  }
  func.func @transform_4(%arg0: i32, %arg1: i32) -> (i32, i32, i32, i32) {
    %c0_i32 = arith.constant 0 : i32
    %c0_i32_0 = arith.constant 0 : i32
    %c0_i32_1 = arith.constant 0 : i32
    return %arg1, %arg0, %c0_i32, %c0_i32_0 : i32, i32, i32, i32
  }
}

</mosaic_0001>

<bundles_post_ra>
// kernel: tpu_custom_call.1
= control target key start
LH: loop header
LB: loop body
LE: loop exit
PB: predicated region body
PF: predicated region fallthrough
CT: control target
= control target key end

     0   :  { %10 = vsyncpa [#allocation3], 0  ;;  %s2018_s0 = inlined_call_operand.hbm [shape: f32[2,8,32], index: 0, kind: input, shape index: {}]   ;;  %s2019_s1 = inlined_call_operand.hbm [shape: f32[1,32,96], index: 1, kind: input, shape index: {}]   ;;  %s2020_s2 = inlined_call_operand.vmem [shape: f32[1,1,96], index: 2, kind: input, shape index: {}]   ;;  %s2021_s3 = inlined_call_operand.hbm [shape: f32[2,8,32], index: 3, kind: output, shape index: {0}]   ;;  %s2022_s4 = inlined_call_operand.hbm [shape: f32[2,4,8,8], index: 4, kind: output, shape index: {1}]  }
   0x1   :  { %12 = vsyncpa [#allocation3 + $0x1], 0 }
   0x2   :  { %13 = vsyncpa [#allocation6], 0 }
   0x3   :  { %14 = vsyncpa [#allocation4], 0 }
   0x4   :  { %16 = vsyncpa [#allocation4 + $0x1], 0 }
   0x5   :  { %17 = vsyncpa [#allocation9], 0 }
   0x6   :  { %19 = vsyncpa [#allocation9 + $0x1], 0  ;;  %s1683_s15 = smov 0   ;;  %s1685_s16 = smov 0  }
   0x7   :  { %s1687_s17 = smov 0   ;;  %s1689_s18 = smov 0  }
   0x8   :  { %s1691_s19 = smov 0   ;;  %s1693_s20 = smov 0  }
   0x9 LB: > { %s1226_s21 = sadd.s32 4294967295, %s1632_s20   ;;  %s1227_s22 = sadd.s32 4294967294, %s1632_s20   ;;  %s1632_s20 = sphi %s1693_s20, %s25_s20   ;;  %s1628_s19 = sphi %s1691_s19, %s2046_s19   ;;  %s1624_s18 = sphi %s1689_s18, %s2045_s18   ;;  %s1620_s17 = sphi %s1687_s17, %s2044_s17   ;;  %s1616_s16 = sphi %s1685_s16, %s2043_s16   ;;  %s1612_s15 = sphi %s1683_s15, %s2042_s15  }
   0xa   : > { %p57_p0 = scmp.ne.s32.totalorder %s1616_s16, %s1612_s15  ;;  %p1717_p1 = scmp.eq.s32.totalorder %s1226_s21, 0 }
   0xb   : > { %p1721_p2 = scmp.eq.s32.totalorder %s1226_s21, 1  ;;  %p141_p3 = scmp.eq.s32.totalorder %s1227_s22, 1 }
   0xc   : > { %s2027_s23 = scalar_select %p1717_p1, 1, 0 }
   0xd   : > { %s2028_s24 = scalar_select %p1721_p2, 1, 0 }
   0xe   : > { %p1727_p4 = por %p1717_p1, %p57_p0  ;;  %p1228_p5 = scmp.ge.s32.totalorder %s1632_s20, 1 }
   0xf   : > { %p1732_p6 = por %p141_p3, %p57_p0  ;;  %p176_p7 = scmp.lt.s32.totalorder %s1632_s20, 3 }
  0x10   : > { %s2029_s25 = scalar_select %p1727_p4, 1, 0 }
  0x11   : > { %s2030_s26 = scalar_select %p1732_p6, 1, 0 }
  0x12   : > { %p1737_p8 = pnand %p1228_p5, %p176_p7  ;;  %s1634_s28 = smov [#allocation5]  }
  0x13   : > { %s191_s29 = sshll.u32 %s1634_s28, 4  ;;  %s34_s5 = sadd.s32 1, %s1628_s19  ;;  %s192_s29 = int_to_ptr.vmem [resolvable:$true] %s191_s29 }
  0x14   : > { %s2031_s27 = scalar_select %p1737_p8, 1, 0 }
  0x15   : > { %p1352_p9 = pneg %p1737_p8  ;;  %s1456_s8 = scalar_lea.hbm %s2019_s1, 512 }
  0x16   : > { %p1457_p12 = scmp.ne.s32.totalorder %s2019_s1, %s1456_s8  ;;  %p1463_p5 = scmp.lt.u32.totalorder %s1456_s8, %s2019_s1 }
  0x17   : > { %p1746_p11 = pnand %p1352_p9, %p1717_p1 }
  0x19   : > { %p1458_p13 = pneg %p1746_p11 }
  0x1b   : > { %p1459_p0 = pnand %p1458_p13, %p1457_p12 }
  0x1d   : > { %p1460_p3 = pneg %p1459_p0 }
  0x1f   : > { %p1465_p7 = pnand %p1463_p5, %p1460_p3 }
  0x21   : > { %1468 = shalt.err (!%p1465_p7)
}
  0x22   : > { %s1469_s13 = scalar_lea.vmem %s192_s29, 512  ;;  %p1477_p1 = scmp.lt.s32.totalorder %s192_s29, %s192_s29 }
  0x23   : > { %p1470_p9 = scmp.ne.s32.totalorder %s192_s29, %s1469_s13  ;;  %p1478_p4 = scmp.lt.s32.totalorder %s1469_s13, %s1469_s13 }
  0x25   : > { %p1472_p10 = pnand %p1470_p9, %p1458_p13  ;;  %p1479_p8 = por %p1478_p4, %p1477_p1 }
  0x27   : > { %p1473_p6 = pneg %p1472_p10 }
  0x29   : > { %p1480_p2 = pnand %p1479_p8, %p1473_p6 }
  0x2b   : > { %1483 = shalt.err (!%p1480_p2)
}
  0x2c   : > { %s1635_s14 = smov 128   ;;  %s1636_s21 = smov 8  }
  0x2d   : > { %1355 = dma.hbm_to_vmem [thread:$0]  (!%p1746_p11), %s2019_s1, 512, %s192_s29, [#allocation6], %s1635_s14, %s1635_s14, %s1636_s21  }
  0x2e   : > { %p35_p1 = scmp.ge.s32.totalorder %s34_s5, 2  ;;  %s44_s6 = sadd.s32 1, %s1620_s17 }
  0x2f   : > { %p51_p2 = scmp.ne.s32.totalorder %s1620_s17, %s1616_s16  ;;  %p52_p4 = scmp.eq.s32.totalorder %s1632_s20, 0 }
  0x30   : > { %s2048_s5 = smov (%p35_p1, %s34_s5), 0  ;;  %p2034_p8 = scmp.ne.s32.totalorder %s2028_s24, 0 }
  0x31   : > { %p1773_p6 = por %p52_p4, %p51_p2  ;;  %s41_s30 = ssub.s32 %s1628_s19, %s2048_s5 }
  0x32   : > { %p1779_p10 = por %p2034_p8, %p51_p2  ;;  %p1368_p12 = scmp.lt.s32.totalorder %s1632_s20, 2 }
  0x33   : > { %p42_p11 = scmp.eq.s32.totalorder %s41_s30, 0  ;;  %s211_s29 = sand.u32 1, %s1620_s17  }
  0x34   : > { %s1232_s9 = sshll.u32 %s211_s29, 3  ;;  %s1233_s11 = sshll.u32 %s1628_s19, 7 }
  0x35   : > { %s1788_s10 = scalar_select %p42_p11, %s1620_s17, %s44_s6  }
  0x36   : > { %s1794_s14 = scalar_lea.hbm %s2018_s0, %s1233_s11  ;;  %s215_s24 = scalar_lea.vmem [#allocation2], %s1232_s9 }
  0x37   : > { %s222_s21 = sshll.u32 %s215_s24, 4  ;;  %p1800_p13 = pnand %p1368_p12, %p1773_p6  ;;  %s1796_s21 = int_to_ptr.vmem [resolvable:$true] %s222_s21 }
  0x38   : > { %s212_s28 = scalar_lea.sflag [#allocation3], %s211_s29  ;;  %s1484_s6 = scalar_lea.hbm %s1794_s14, 128 }
  0x39   : > { %p1485_p0 = scmp.ne.s32.totalorder %s1794_s14, %s1484_s6  ;;  %p1486_p3 = pneg %p1800_p13 }
  0x3a   : > { %s1489_s11 = scalar_lea.hbm %s2018_s0, 256  ;;  %p1490_p9 = scmp.lt.u32.totalorder %s1794_s14, %s2018_s0 }
  0x3b   : > { %p1487_p5 = pnand %p1486_p3, %p1485_p0  ;;  %p1491_p1 = scmp.lt.u32.totalorder %s1489_s11, %s1484_s6 }
  0x3c   : > { %p1493_p4 = scmp.lt.u32.totalorder %s1484_s6, %s1794_s14 }
  0x3d   : > { %p1488_p7 = pneg %p1487_p5  ;;  %p1492_p2 = por %p1491_p1, %p1490_p9 }
  0x3f   : > { %p1494_p6 = por %p1493_p4, %p1492_p2 }
  0x41   : > { %p1495_p8 = pnand %p1494_p6, %p1488_p7 }
  0x43   : > { %1498 = shalt.err (!%p1495_p8)
}
  0x44   : > { %s1499_s29 = scalar_lea.vmem %s1796_s21, 128  ;;  %s1637_s13 = smov [#allocation2]  }
  0x45   : > { %p1500_p12 = scmp.ne.s32.totalorder %s1796_s21, %s1499_s29  ;;  %s1504_s24 = sshll.u32 %s1637_s13, 4  ;;  %s1505_s24 = int_to_ptr.vmem [resolvable:$false] %s1504_s24 }
  0x46   : > { %s1506_s30 = scalar_lea.vmem %s1505_s24, 256  ;;  %p1507_p5 = scmp.lt.s32.totalorder %s1796_s21, %s1505_s24 }
  0x47   : > { %p1502_p11 = pnand %p1500_p12, %p1486_p3  ;;  %p1508_p9 = scmp.lt.s32.totalorder %s1506_s30, %s1499_s29 }
  0x49   : > { %p1503_p0 = pneg %p1502_p11  ;;  %p1509_p1 = por %p1508_p9, %p1507_p5 }
  0x4b   : > { %p1510_p2 = pnand %p1509_p1, %p1503_p0 }
  0x4d   : > { %1513 = shalt.err (!%p1510_p2)
}
  0x4e   : > { %1359 = dma.hbm_to_vmem [thread:$0]  (!%p1800_p13), %s1794_s14, 128, %s1796_s21, %s212_s28  }
  0x4f   : > { %p2037_p7 = scmp.ne.s32.totalorder %s2031_s27, 0 }
  0x50   : > { %s1832_s6 = sand.u32 (!%p2037_p7), 1, %s1616_s16   ;;  %p2038_p3 = scmp.ne.s32.totalorder (!%p2037_p7), %s2029_s25, 0 }
  0x51   : > { %231 = sbr.rel (%p2037_p7) target bundleno = 1359 (0x54f), region = 32  ;;  %s1235_s9 = sshll.u32 (!%p2037_p7), %s1832_s6, 3 }
  0x52   : > { %s234_s11 = scalar_lea.sflag (!%p2037_p7), [#allocation3], %s1832_s6  ;;  %s237_s7 = scalar_lea.vmem (!%p2037_p7), [#allocation2], %s1235_s9 }
  0x58   : > { %1595 = dma.done.wait (%p2038_p3), %s234_s11, 128  }
  0x59   : > { %1597 = vsyncadd (%p2038_p3), %s234_s11, 4294967168  ;;  %p2039_p13 = scmp.ne.s32.totalorder %s2027_s23, 0 }
  0x5b   : > { %1599 = dma.done.wait (%p2039_p13), [#allocation6], 512  }
  0x5c   : > { %1601 = vsyncadd (%p2039_p13), [#allocation6], 4294966784  ;;  %v1638_v0 = vmov 0.0|0.0   ;;  %vm1639_vm0 = vmmov 0   ;;  %v1640_v1 = vmov 0.0   ;;  %v279_v2 = vld [vmem:[#allocation5] sm:$0xff] }
  0x5d   : > { %1336 = vmatprep.subr.bf16.mxu0 %v1638_v0  ;;  %1293 = vmatprep.mubr.msk.f32.mxu0 %vm1639_vm0, %v1640_v1  ;;  %v280_v3 = vld [vmem:[#allocation5 + $0x8] sm:$0xff]  ;;  %v281_v4 = vld [vmem:[#allocation5 + $0x10] sm:$0xff]  ;;  %v282_v6 = vld [vmem:[#allocation5 + $0x18] sm:$0xff]  ;;  %vm290_vm1 = vcmask 261120   ;;  %s1641_s27 = smov 120   ;;  %s1642_s14 = smov 96  }
  0x5e   : > { %1296 = vmatprep.subr.mxu1 %v1640_v1  ;;  %1298 = vmatprep.mubr.msk.f32.mxu1 %vm1639_vm0, %v1640_v1  ;;  %v1337_v5 = vpack.c.bf16 %v280_v3, %v279_v2  ;;  %v1340_v7 = vpack.c.bf16 %v282_v6, %v281_v4  ;;  %v278_v8 = vld [vmem:[%s237_s7] sm:$0xff]  ;;  %s1643_s21 = smov 80   ;;  %s1644_s22 = smov 88   ;;  %vm367_vm2 = vcmask 64512  }
  0x5f   : > { %v1239_v9 = vld [vmem:[%s2020_s2] ss:$0 sm:$0xff]  ;;  %s1645_s28 = smov 72   ;;  %s1646_s12 = smov 112  }
  0x60   : > { %1338 = vmatpush3.bf16.msra.mxu0 %v1337_v5  ;;  %s1647_s29 = smov 104   ;;  %s1648_s13 = smov 56  }
  0x61   : > { %1339 = vmatprep.subr.bf16.mxu0 %v1638_v0  ;;  %s1649_s24 = smov 64   ;;  %s1650_s30 = smov 48  }
  0x62   : > { %s1651_s11 = smov 40   ;;  %s1238_s7 = sshll.u32 %s1832_s6, 5 }
  0x63   : > { %s1898_s23 = scalar_lea.vmem [#allocation8], %s1238_s7  ;;  %s1922_s25 = scalar_lea.vmem [#allocation7], %s1235_s9 }
  0x64   : > { %1341 = vmatpush3.bf16.msra.mxu0 %v1340_v7  ;;  %s1056_s9 = scalar_lea.sflag [#allocation9], %s1832_s6 }
  0x65   : > { %1306 = vmatprep.subr.mxu0 %v1640_v1 }
  0x67   : > { %1294 = vmatmul.mubr.msk.f32.vlgmr.msra.gmra.mrb[0].mxu0 %vm290_vm1, %v278_v8 }
  0x68   : > { %1308 = vmatprep.mubr.msk.f32.mxu0 %vm1639_vm0, %v1640_v1 }
 0x13a   : > { %v360_v10 = vpop.f32.mrb[0].mxu0 }
 0x13b   : > { %v1857_v11 = vadd.f32 %v1239_v9, %v360_v10  ;;  %v1295_v12 = vpop.f32.mrb[1].mxu0 }
 0x13d   : > { %531 = vrot.lane.b32.xlu1 %v1857_v11, %s1641_s27  ;;  %365 = vrot.lane.b32.xlu0 %v1857_v11, %s1642_s14  ;;  %s1652_s27 = smov 8   ;;  %s1263_s14 = sshll.u32 %s1624_s18, 9 }
 0x141   : > { %706 = vrot.lane.b32.xlu1 %v1857_v11, %s1643_s21  ;;  %533 = vrot.lane.b32.xlu0 %v1857_v11, %s1644_s22  ;;  %s1085_s21 = sshll.u32 %s1898_s23, 4  ;;  %s1934_s21 = int_to_ptr.vmem [resolvable:$true] %s1085_s21 }
 0x145   : > { %879 = vrot.lane.b32.xlu1 %v1857_v11, %s1645_s28  ;;  %704 = vrot.lane.b32.xlu0 %v1857_v11, %s1646_s12  ;;  %s1932_s12 = scalar_lea.hbm %s2022_s4, %s1263_s14 }
 0x149   : > { %877 = vrot.lane.b32.xlu0 %v1857_v11, %s1647_s29  ;;  %s1514_s29 = scalar_lea.vmem %s1934_s21, 512 }
 0x14a   : > { %p1515_p4 = scmp.ne.s32.totalorder %s1934_s21, %s1514_s29 }
 0x14c   : > { %p1516_p6 = pnand %p1515_p4, %p1779_p10 }
 0x14e   : > { %p1517_p8 = pneg %p1516_p6 }
 0x1af   : > { %v532_v13 = vpop.permute.xlu1 %531  ;;  %v366_v14 = vpop.permute.xlu0 %365 }
 0x1b0   : > { %1297 = vmatpush3.xpose.msk.msra.mxu1 %vm367_vm2, %v366_v14 }
 0x1b1   : > { %1301 = vmatprep.subr.mxu1 %v1640_v1 }
 0x1b3   : > { %1299 = vmatmul.mubr.msk.f32.vlgmr.msra.gmra.mrb[0].mxu1 %vm367_vm2, %v1857_v11  ;;  %v534_v15 = vpop.permute.xlu0 %533  ;;  %v707_v16 = vpop.permute.xlu1 %706 }
 0x1b4   : > { %1307 = vmatpush3.xpose.msk.msra.mxu0 %vm367_vm2, %v534_v15  ;;  %1303 = vmatprep.mubr.msk.f32.mxu1 %vm1639_vm0, %v1640_v1 }
 0x1b5   : > { %1316 = vmatprep.subr.mxu0 %v1640_v1 }
 0x1b7   : > { %1309 = vmatmul.mubr.msk.f32.vlgmr.msra.gmra.mrb[2].mxu0 %vm367_vm2, %v532_v13  ;;  %v705_v17 = vpop.permute.xlu0 %704  ;;  %v880_v18 = vpop.permute.xlu1 %879 }
 0x1b8   : > { %1317 = vmatpush3.xpose.msk.msra.mxu0 %vm367_vm2, %v707_v16  ;;  %1318 = vmatprep.mubr.msk.f32.mxu0 %vm1639_vm0, %v1640_v1 }
 0x1b9   : > { %1326 = vmatprep.subr.mxu0 %v1640_v1 }
 0x1bb   : > { %1319 = vmatmul.mubr.msk.f32.vlgmr.msra.gmra.mrb[4].mxu0 %vm367_vm2, %v705_v17  ;;  %v878_v19 = vpop.permute.xlu0 %877 }
 0x1bc   : > { %1327 = vmatpush3.xpose.msk.msra.mxu0 %vm367_vm2, %v880_v18  ;;  %1328 = vmatprep.mubr.msk.f32.mxu0 %vm1639_vm0, %v1640_v1 }
 0x1bf   : > { %1329 = vmatmul.mubr.msk.f32.vlgmr.msra.gmra.mrb[6].mxu0 %vm367_vm2, %v878_v19 }
 0x286   : > { %v438_v20 = vpop.f32.mrb[0].mxu1 }
 0x287   : > { %v1300_v21 = vpop.f32.mrb[1].mxu1  ;;  %v442_v22 = vsel %vm367_vm2, %v438_v20, -inf }
 0x288   : > { %443 = vmax.xlane.f32.xlu1 %v442_v22 }
 0x28a   : > { %v605_v23 = vpop.f32.mrb[2].mxu0 }
 0x28b   : > { %v1310_v24 = vpop.f32.mrb[3].mxu0  ;;  %v609_v25 = vsel %vm367_vm2, %v605_v23, -inf }
 0x28c   : > { %610 = vmax.xlane.f32.xlu0 %v609_v25 }
 0x28e   : > { %v778_v26 = vpop.f32.mrb[4].mxu0 }
 0x28f   : > { %v1320_v27 = vpop.f32.mrb[5].mxu0  ;;  %v782_v28 = vsel %vm367_vm2, %v778_v26, -inf }
 0x290   : > { %783 = vmax.xlane.f32.xlu0 %v782_v28 }
 0x292   : > { %v951_v29 = vpop.f32.mrb[6].mxu0 }
 0x293   : > { %v1330_v30 = vpop.f32.mrb[7].mxu0  ;;  %v955_v31 = vsel %vm367_vm2, %v951_v29, -inf }
 0x294   : > { %956 = vmax.xlane.f32.xlu1 %v955_v31 }
 0x2a5   : > { %622 = vrot.lane.b32.xlu1 %v1857_v11, %s1648_s13  ;;  %s1653_s13 = smov [#allocation8]  }
 0x315   : > { %v444_v32 = vpop.xlane.xlu1 %443 }
 0x316   : > { %v445_v33 = vsub.f32 %v438_v20, %v444_v32 }
 0x318   : > { %v446_v34 = vmul.f32 1.442695, %v445_v33 }
 0x319   : > { %v611_v35 = vpop.xlane.xlu0 %610 }
 0x31a   : > { %1440 = vpow2.f32 %v446_v34  ;;  %v612_v36 = vsub.f32 %v605_v23, %v611_v35 }
 0x31c   : > { %v613_v37 = vmul.f32 1.442695, %v612_v36 }
 0x31d   : > { %v784_v47 = vpop.xlane.xlu0 %783 }
 0x31e   : > { %1442 = vpow2.f32 %v613_v37  ;;  %v785_v48 = vsub.f32 %v778_v26, %v784_v47 }
 0x320   : > { %v786_v49 = vmul.f32 1.442695, %v785_v48 }
 0x321   : > { %v957_v38 = vpop.xlane.xlu1 %956 }
 0x322   : > { %v958_v39 = vsub.f32 %v951_v29, %v957_v38 }
 0x324   : > { %v1441_v40 = vpop.eup %1440  ;;  %v959_v41 = vmul.f32 1.442695, %v958_v39 }
 0x325   : > { %v448_v42 = vsel %vm367_vm2, %v1441_v40, 0.0  ;;  %v623_v52 = vpop.permute.xlu1 %622 }
 0x326   : > { %1444 = vpow2.f32 %v959_v41  ;;  %449 = vadd.xlane.f32.xlu0 %v448_v42 }
 0x327   : > { %1446 = vpow2.f32 %v786_v49 }
 0x328   : > { %v1443_v43 = vpop.eup %1442 }
 0x329   : > { %v615_v44 = vsel %vm367_vm2, %v1443_v43, 0.0 }
 0x32a   : > { %616 = vadd.xlane.f32.xlu1 %v615_v44 }
 0x330   : > { %v1445_v45 = vpop.eup %1444 }
 0x331   : > { %v961_v46 = vsel %vm367_vm2, %v1445_v45, 0.0  ;;  %v1447_v50 = vpop.eup %1446 }
 0x332   : > { %962 = vadd.xlane.f32.xlu1 %v961_v46  ;;  %v788_v51 = vsel %vm367_vm2, %v1447_v50, 0.0 }
 0x33c   : > { %454 = vrot.lane.b32.xlu0 %v1857_v11, %s1649_s24  ;;  %s1518_s24 = sshll.u32 %s1653_s13, 4  ;;  %s1519_s24 = int_to_ptr.vmem [resolvable:$false] %s1518_s24 }
 0x33d   : > { %p1521_p12 = scmp.lt.s32.totalorder %s1934_s21, %s1519_s24 }
 0x343   : > { %795 = vrot.lane.b32.xlu1 %v1857_v11, %s1650_s30  ;;  %s1520_s30 = scalar_lea.vmem %s1519_s24, 1024 }
 0x344   : > { %p1522_p11 = scmp.lt.s32.totalorder %s1520_s30, %s1514_s29 }
 0x346   : > { %p1523_p0 = por %p1522_p11, %p1521_p12 }
 0x348   : > { %p1524_p5 = pnand %p1523_p0, %p1517_p8 }
 0x35b   : > { %789 = vadd.xlane.f32.xlu0 %v788_v51 }
 0x371   : > { %968 = vrot.lane.b32.xlu0 %v1857_v11, %s1651_s11 }
 0x3b3   : > { %v450_v53 = vpop.xlane.xlu0 %449 }
 0x3b4   : > { %1448 = vrcp.f32 %v450_v53 }
 0x3b7   : > { %v455_v54 = vpop.permute.xlu0 %454  ;;  %v617_v55 = vpop.xlane.xlu1 %616 }
 0x3b8   : > { %1450 = vrcp.f32 %v617_v55  ;;  %1302 = vmatpush3.msra.mxu1 %v455_v54 }
 0x3b9   : > { %1311 = vmatprep.subr.mxu1 %v1640_v1 }
 0x3be   : > { %v1449_v56 = vpop.eup %1448 }
 0x3bf   : > { %v452_v57 = vmul.f32 %v1449_v56, %v1441_v40  ;;  %v963_v58 = vpop.xlane.xlu1 %962 }
 0x3c0   : > { %1452 = vrcp.f32 %v963_v58 }
 0x3c1   : > { %453 = vst.msk [vmem:[%s1898_s23] sm:$0xff] %vm367_vm2, %v452_v57  ;;  %1304 = vmatmul.mubr.msk.f32.vlgmr.msra.gmra.mrb[2].mxu1 %vm367_vm2, %v452_v57 }
 0x3c2   : > { %v1451_v59 = vpop.eup %1450  ;;  %1312 = vmatpush3.msra.mxu1 %v623_v52  ;;  %1313 = vmatprep.mubr.msk.f32.mxu1 %vm1639_vm0, %v1640_v1 }
 0x3c3   : > { %v619_v60 = vmul.f32 %v1451_v59, %v1443_v43  ;;  %v796_v61 = vpop.permute.xlu1 %795  ;;  %1321 = vmatprep.subr.mxu1 %v1640_v1 }
 0x3c5   : > { %1246 = vst.msk [vmem:[%s1898_s23 + $0x8] sm:$0xff] %vm367_vm2, %v619_v60  ;;  %1314 = vmatmul.mubr.msk.f32.vlgmr.msra.gmra.mrb[4].mxu1 %vm367_vm2, %v619_v60 }
 0x3c6   : > { %1322 = vmatpush3.msra.mxu1 %v796_v61  ;;  %1323 = vmatprep.mubr.msk.f32.mxu1 %vm1639_vm0, %v1640_v1 }
 0x3c7   : > { %1331 = vmatprep.subr.mxu1 %v1640_v1 }
 0x3ca   : > { %v1453_v62 = vpop.eup %1452 }
 0x3cb   : > { %v965_v63 = vmul.f32 %v1453_v62, %v1445_v45 }
 0x3cd   : > { %1254 = vst.msk [vmem:[%s1898_s23 + $0x18] sm:$0xff] %vm367_vm2, %v965_v63 }
 0x3e8   : > { %v790_v0 = vpop.xlane.xlu0 %789 }
 0x3e9   : > { %1454 = vrcp.f32 %v790_v0 }
 0x3ec   : > { %v969_v4 = vpop.permute.xlu0 %968 }
 0x3f3   : > { %v1455_v2 = vpop.eup %1454 }
 0x3f4   : > { %v792_v3 = vmul.f32 %v1455_v2, %v1447_v50 }
 0x3f6   : > { %1250 = vst.msk [vmem:[%s1898_s23 + $0x10] sm:$0xff] %vm367_vm2, %v792_v3  ;;  %1324 = vmatmul.mubr.msk.f32.vlgmr.msra.gmra.mrb[6].mxu1 %vm367_vm2, %v792_v3 }
 0x3f7   : > { %1332 = vmatpush3.msra.mxu1 %v969_v4  ;;  %1333 = vmatprep.mubr.msk.f32.mxu1 %vm1639_vm0, %v1640_v1 }
 0x3fa   : > { %1334 = vmatmul.mubr.msk.f32.vlgmr.msra.gmra.mrb[8].mxu1 %vm367_vm2, %v965_v63 }
 0x494   : > { %v526_v5 = vpop.f32.mrb[2].mxu1 }
 0x495   : > { %530 = vst.msk [vmem:[%s1922_s25] sm:$0xff] %vm367_vm2, %v526_v5  ;;  %v1305_v6 = vpop.f32.mrb[3].mxu1 }
 0x498   : > { %v694_v7 = vpop.f32.mrb[4].mxu1 }
 0x499   : > { %699 = vrot.lane.b32.xlu1 %v694_v7, %s1652_s27  ;;  %v1315_v8 = vpop.f32.mrb[5].mxu1 }
 0x49a   : > { %1527 = shalt.err (!%p1524_p5)
}
 0x49b   : > { %s1528_s11 = scalar_lea.hbm %s1932_s12, 512  ;;  %s1532_s14 = scalar_lea.hbm %s2022_s4, 1024 }
 0x49c   : > { %p1529_p9 = scmp.ne.s32.totalorder %s1932_s12, %s1528_s11  ;;  %p1533_p7 = scmp.lt.u32.totalorder %s1932_s12, %s2022_s4 }
 0x49d   : > { %p1534_p3 = scmp.lt.u32.totalorder %s1532_s14, %s1528_s11  ;;  %p1536_p4 = scmp.lt.u32.totalorder %s1528_s11, %s1932_s12 }
 0x49e   : > { %p1530_p1 = pnand %p1529_p9, %p1779_p10 }
 0x49f   : > { %p1535_p13 = por %p1534_p3, %p1533_p7 }
 0x4a0   : > { %p1531_p2 = pneg %p1530_p1 }
 0x4a1   : > { %p1537_p6 = por %p1536_p4, %p1535_p13 }
 0x4a3   : > { %p1538_p8 = pnand %p1537_p6, %p1531_p2 }
 0x4a5   : > { %1541 = shalt.err (!%p1538_p8)
}
 0x4a6   : > { %s1654_s29 = smov 128   ;;  %s1655_s13 = smov 16   ;;  %vm702_vm3 = vcmask 130112   ;;  %vm875_vm4 = vcmask 195712   ;;  %vm1048_vm5 = vcmask 261312  }
 0x4a7   : > { %1349 = dma.vmem_to_hbm [thread:$0]  (%p1779_p10), %s1934_s21, 512, %s1932_s12, %s1056_s9, %s1654_s29, %s1654_s29, %s1652_s27  }
 0x4a8   : > { %s1656_s24 = smov 24   ;;  %s1258_s30 = sshll.u32 %s1624_s18, 7 }
 0x4a9   : > { %s1070_s11 = sshll.u32 %s1922_s25, 4  ;;  %s1968_s12 = scalar_lea.hbm %s2021_s3, %s1258_s30  ;;  %s1970_s11 = int_to_ptr.vmem [resolvable:$true] %s1070_s11 }
 0x4aa   : > { %s1051_s9 = scalar_lea.sflag [#allocation4], %s1832_s6  ;;  %s1542_s7 = scalar_lea.vmem %s1970_s11, 128 }
 0x4ab   : > { %p1543_p12 = scmp.ne.s32.totalorder %s1970_s11, %s1542_s7  ;;  %s1657_s18 = smov [#allocation7]  }
 0x4ac   : > { %s1546_s23 = sshll.u32 %s1657_s18, 4  ;;  %s1547_s23 = int_to_ptr.vmem [resolvable:$false] %s1546_s23 }
 0x4ad   : > { %p1544_p11 = pnand %p1543_p12, %p1779_p10  ;;  %s1548_s14 = scalar_lea.vmem %s1547_s23, 256 }
 0x4ae   : > { %p1549_p5 = scmp.lt.s32.totalorder %s1970_s11, %s1547_s23  ;;  %p1550_p9 = scmp.lt.s32.totalorder %s1548_s14, %s1542_s7 }
 0x4af   : > { %p1545_p0 = pneg %p1544_p11 }
 0x4b0   : > { %p1551_p1 = por %p1550_p9, %p1549_p5 }
 0x4b2   : > { %p1552_p2 = pnand %p1551_p1, %p1545_p0 }
 0x4c9   : > { %v867_v1 = vpop.f32.mrb[6].mxu1 }
 0x4ca   : > { %872 = vrot.lane.b32.xlu0 %v867_v1, %s1655_s13  ;;  %v1325_v9 = vpop.f32.mrb[7].mxu1 }
 0x4cd   : > { %v1040_v10 = vpop.f32.mrb[8].mxu1 }
 0x4ce   : > { %1045 = vrot.lane.b32.xlu1 %v1040_v10, %s1656_s24  ;;  %v1335_v11 = vpop.f32.mrb[9].mxu1 }
 0x50b   : > { %v700_v12 = vpop.permute.xlu1 %699 }
 0x50c   : > { %703 = vst.msk [vmem:[%s1922_s25] sm:$0xff] %vm702_vm3, %v700_v12 }
 0x53c   : > { %v873_v13 = vpop.permute.xlu0 %872 }
 0x53d   : > { %876 = vst.msk [vmem:[%s1922_s25] sm:$0xff] %vm875_vm4, %v873_v13 }
 0x540   : > { %v1046_v14 = vpop.permute.xlu1 %1045 }
 0x541   : > { %1049 = vst.msk [vmem:[%s1922_s25] sm:$0xff] %vm1048_vm5, %v1046_v14 }
 0x542   : > { %1555 = shalt.err (!%p1552_p2)
}
 0x543   : > { %s1556_s6 = scalar_lea.hbm %s1968_s12, 128  ;;  %s1560_s28 = scalar_lea.hbm %s2021_s3, 256 }
 0x544   : > { %p1557_p7 = scmp.ne.s32.totalorder %s1968_s12, %s1556_s6  ;;  %p1561_p4 = scmp.lt.u32.totalorder %s1968_s12, %s2021_s3 }
 0x545   : > { %p1562_p6 = scmp.lt.u32.totalorder %s1560_s28, %s1556_s6  ;;  %p1564_p12 = scmp.lt.u32.totalorder %s1556_s6, %s1968_s12 }
 0x546   : > { %p1558_p3 = pnand %p1557_p7, %p1779_p10 }
 0x547   : > { %p1563_p8 = por %p1562_p6, %p1561_p4 }
 0x548   : > { %p1559_p13 = pneg %p1558_p3 }
 0x549   : > { %p1565_p11 = por %p1564_p12, %p1563_p8 }
 0x54b   : > { %p1566_p0 = pnand %p1565_p11, %p1559_p13 }
 0x54d   : > { %1569 = shalt.err (!%p1566_p0)
}
 0x54e   : > { %1348 = dma.vmem_to_hbm [thread:$0]  (%p1779_p10), %s1970_s11, 128, %s1968_s12, %s1051_s9  }
 0x54f PF: > { %s1100_s24 = sand.u32 1, %s1612_s15   ;;  %p2040_p5 = scmp.ne.s32.totalorder %s2030_s26, 0 }
 0x550   : > { %p2041_p9 = scmp.ge.s32.totalorder %s1632_s20, 2  ;;  %s1101_s30 = scalar_lea.sflag [#allocation4], %s1100_s24 }
 0x552   : > { %p1361_p1 = pnand %p2041_p9, %p2040_p5 }
 0x554   : > { %1603 = dma.done.wait (!%p1361_p1), %s1101_s30, 128  }
 0x555   : > { %1605 = vsyncadd (!%p1361_p1), %s1101_s30, 4294967168  ;;  %s1110_s27 = scalar_lea.sflag [#allocation9], %s1100_s24 }
 0x556   : > { %1607 = dma.done.wait (!%p1361_p1), %s1110_s27, 512  }
 0x557   : > { %1609 = vsyncadd (!%p1361_p1), %s1110_s27, 4294966784  ;;  %s25_s20 = sadd.s32 1, %s1632_s20   ;;  %s2042_s15 = smov %s1616_s16 }
 0x558   : > { %p22_p2 = scmp.ge.s32.totalorder %s25_s20, 4   ;;  %s2043_s16 = smov %s1620_s17 }
 0x559   : > { %s2044_s17 = smov %s1788_s10  ;;  %s2045_s18 = smov %s1628_s19 }
 0x55a   : > { %s2046_s19 = smov %s2048_s5  ;;  %24 = sbr.rel (!%p22_p2) target bundleno = 9 (0x9), region = 105 }
 0x561   :  { %1115 = vsyncpa [#allocation3], 1 }
 0x562   :  { %1117 = vsyncpa [#allocation3 + $0x1], 1 }
 0x563   :  { %1118 = vsyncpa [#allocation6], 1 }
 0x564   :  { %1119 = vsyncpa [#allocation4], 1 }
 0x565   :  { %1121 = vsyncpa [#allocation4 + $0x1], 1 }
 0x566   :  { %1122 = vsyncpa [#allocation9], 1 }
 0x567   :  { %1124 = vsyncpa [#allocation9 + $0x1], 1 }

</bundles_post_ra>
